<compile_context>
chip_gen: v5e
topology: v5e:2x2
jax: 0.10.0
libtpu: 0.0.40
codegen_flags: <defaults>
</compile_context>

<pallas_src>
import jax
import jax.numpy as jnp
from jax.experimental import pallas as pl
from jax.experimental.pallas import tpu as pltpu

# ---- static config (matches Conv2d(4, 8, 3, padding=1) + BatchNorm2d(8)) ----
N, CIN, H, W = 2, 4, 16, 16
COUT, KH, KW = 8, 3, 3
PAD = 1                      # "same" padding for 3x3, stride 1
EPS = 1e-5                   # nn.BatchNorm2d default eps
KDIM = KH * KW * CIN         # 36
KDIM_AUG = KDIM + 1          # 37: bias folded in as an extra GEMM column
ROWS = N * H * W             # 512
ROW_TILE = 512               # single grid step (launch-latency bound at this size)
INV_SQRT2 = 0.7071067811865476
SQRT_2_OVER_PI = 0.7978845608028654


def conv_bn_gelu_kernel(w_ref, p_ref, o_ref):
    # Conv2d + folded BN scale + folded bias: one MXU matmul, rows on lanes.
    y = jnp.dot(w_ref[...], p_ref[...], preferred_element_type=jnp.float32)
    # GELU, tanh approximation (EUP path).  Epilogue stays in f32.
    o_ref[...] = 0.5 * y * (1.0 + jnp.tanh(SQRT_2_OVER_PI * (y + 0.044715 * y * y * y)))


def conv_group_forward(x_nchw, conv_w, conv_b, gamma, beta, run_mean, run_var):
    """x_nchw: (N, CIN, H, W) float32; returns (N, COUT, H, W) float32."""
    # NCHW -> NHWC, pad spatially (wrapper glue; see TODO about fusing).
    x = jnp.transpose(x_nchw, (0, 2, 3, 1)).astype(jnp.float32)
    xp = jnp.pad(x, ((0, 0), (PAD, PAD), (PAD, PAD), (0, 0)))

    # im2col directly in the transposed (KDIM, rows) layout the kernel wants:
    #   taps: (KH*KW, N, H, W, CIN) -> (KH*KW, CIN, N, H, W) -> (KDIM, N*H*W)
    taps = jnp.stack(
        [xp[:, ky:ky + H, kx:kx + W, :] for ky in range(KH) for kx in range(KW)],
        axis=0)
    patches_t = jnp.transpose(taps, (0, 4, 1, 2, 3)).reshape(KDIM, ROWS)
    # Append a constant ones-row so the folded bias rides the GEMM.
    patches_aug = jnp.concatenate(
        [patches_t, jnp.ones((1, ROWS), jnp.float32)], axis=0)        # (37, ROWS)

    # PyTorch conv weight (COUT, CIN, KH, KW) -> (COUT, KH, KW, CIN) -> (COUT, KDIM).
    wmat = jnp.transpose(conv_w, (0, 2, 3, 1)).reshape(COUT, KDIM).astype(jnp.float32)

    # Fold BatchNorm (eval) into the weight (scale) and a per-channel bias,
    # then fold the bias in as the 37th weight column.
    scale = gamma / jnp.sqrt(run_var + EPS)                            # (COUT,)
    w_scaled = wmat * scale[:, None]                                   # (COUT, KDIM)
    bias = ((conv_b - run_mean) * scale + beta).astype(jnp.float32)    # (COUT,)
    w_aug = jnp.concatenate([w_scaled, bias[:, None]], axis=1)         # (COUT, 37)

    assert ROWS % ROW_TILE == 0  # pad rows / use pl.cdiv + masking for general shapes

    out = pl.pallas_call(
        conv_bn_gelu_kernel,
        out_shape=jax.ShapeDtypeStruct((COUT, ROWS), jnp.float32),
        grid=(ROWS // ROW_TILE,),
        in_specs=[
            pl.BlockSpec((COUT, KDIM_AUG), lambda i: (0, 0)),      # weight+bias (folded)
            pl.BlockSpec((KDIM_AUG, ROW_TILE), lambda i: (0, i)),  # patches+ones row
        ],
        out_specs=pl.BlockSpec((COUT, ROW_TILE), lambda i: (0, i)),
        compiler_params=pltpu.CompilerParams(dimension_semantics=("arbitrary",)),
    )(w_aug, patches_aug)

    # (COUT, N*H*W) -> (COUT, N, H, W) -> NCHW
    return jnp.transpose(out.reshape(COUT, N, H, W), (1, 0, 2, 3))


def conv_group_reference(x_nchw, conv_w, conv_b, gamma, beta, run_mean, run_var):
    y = jax.lax.conv_general_dilated(
        x_nchw, conv_w, window_strides=(1, 1),
        padding=((PAD, PAD), (PAD, PAD)),
        dimension_numbers=("NCHW", "OIHW", "NCHW"))
    y = y + conv_b.reshape(1, COUT, 1, 1)
    y = (y - run_mean.reshape(1, COUT, 1, 1)) / jnp.sqrt(run_var.reshape(1, COUT, 1, 1) + EPS)
    y = y * gamma.reshape(1, COUT, 1, 1) + beta.reshape(1, COUT, 1, 1)
    # Exact erf-GELU (PyTorch nn.GELU() default) as the reference.
    return 0.5 * y * (1.0 + jax.lax.erf(y * INV_SQRT2))


if __name__ == "__main__":
    key = jax.random.PRNGKey(0)
    kx, kw, kb, kg, kbt, krm, krv = jax.random.split(key, 7)

    x = jax.random.normal(kx, (N, CIN, H, W), jnp.float32)
    # Deterministic synthetic parameters (Conv2d(4, 8, 3, padding=1) + BatchNorm2d(8)).
    conv_w = 0.1 * jax.random.normal(kw, (COUT, CIN, KH, KW), jnp.float32)
    conv_b = 0.1 * jax.random.normal(kb, (COUT,), jnp.float32)
    gamma = 0.5 + jax.random.uniform(kg, (COUT,), jnp.float32)       # in [0.5, 1.5)
    beta = 0.1 * jax.random.normal(kbt, (COUT,), jnp.float32)
    run_mean = 0.1 * jax.random.normal(krm, (COUT,), jnp.float32)
    run_var = 0.5 + jax.random.uniform(krv, (COUT,), jnp.float32)    # positive

    out = conv_group_forward(x, conv_w, conv_b, gamma, beta, run_mean, run_var)
    out = jax.block_until_ready(out)

    ref = conv_group_reference(x, conv_w, conv_b, gamma, beta, run_mean, run_var)
    ref = jax.block_until_ready(ref)

    assert out.shape == (N, COUT, H, W)
    assert jnp.allclose(out, ref, atol=2e-3, rtol=2e-3), float(jnp.max(jnp.abs(out - ref)))
    print("KERNEL_OK")
</pallas_src>

<mosaic_0001>
module attributes {stable_mosaic.version = 11 : i64} {
  func.func @conv_bn_gelu_kernel(%arg0: i32, %arg1: memref<8x37xf32, #tpu.memory_space<vmem>>, %arg2: memref<37x512xf32, #tpu.memory_space<vmem>>, %arg3: memref<8x512xf32, #tpu.memory_space<vmem>>) attributes {dimension_semantics = [#tpu.dimension_semantics<arbitrary>], iteration_bounds = array<i64: 1>, scalar_prefetch = 0 : i64, scratch_operands = 0 : i64, tpu.core_type = #tpu.core_type<tc>, window_params = [{pipeline_mode = #tpu.pipeline_mode<synchronous>, transform_indices = @transform_0, window_bounds = array<i64: 8, 37>}, {transform_indices = @transform_1, window_bounds = array<i64: 37, 512>}, {transform_indices = @transform_2, window_bounds = array<i64: 8, 512>}]} {
    %c0 = arith.constant 0 : index
    %c0_0 = arith.constant 0 : index
    %0 = vector.load %arg1[%c0, %c0_0] : memref<8x37xf32, #tpu.memory_space<vmem>>, vector<8x37xf32>
    %c0_1 = arith.constant 0 : index
    %c0_2 = arith.constant 0 : index
    %1 = vector.load %arg2[%c0_1, %c0_2] : memref<37x512xf32, #tpu.memory_space<vmem>>, vector<37x512xf32>
    %cst = arith.constant dense<0.000000e+00> : vector<8x512xf32>
    %2 = tpu.matmul %0, %1, %cst {dimension_numbers = #tpu.dot_dimension_numbers<[1], [0], [0], [1], [0, 0, 1, 1], [], []>} : vector<8x37xf32>, vector<37x512xf32>, vector<8x512xf32> -> vector<8x512xf32>
    %cst_3 = arith.constant 5.000000e-01 : f32
    %3 = vector.broadcast %cst_3 : f32 to vector<8x512xf32>
    %4 = arith.mulf %3, %2 : vector<8x512xf32>
    %cst_4 = arith.constant 4.471500e-02 : f32
    %5 = vector.broadcast %cst_4 : f32 to vector<8x512xf32>
    %6 = arith.mulf %5, %2 : vector<8x512xf32>
    %7 = arith.mulf %6, %2 : vector<8x512xf32>
    %8 = arith.mulf %7, %2 : vector<8x512xf32>
    %9 = arith.addf %2, %8 : vector<8x512xf32>
    %cst_5 = arith.constant 0.797884583 : f32
    %10 = vector.broadcast %cst_5 : f32 to vector<8x512xf32>
    %11 = arith.mulf %10, %9 : vector<8x512xf32>
    %12 = math.tanh %11 : vector<8x512xf32>
    %cst_6 = arith.constant 1.000000e+00 : f32
    %13 = vector.broadcast %cst_6 : f32 to vector<8x512xf32>
    %14 = arith.addf %13, %12 : vector<8x512xf32>
    %15 = arith.mulf %4, %14 : vector<8x512xf32>
    %c0_7 = arith.constant 0 : index
    %c0_8 = arith.constant 0 : index
    %16 = vector.load %arg3[%c0_7, %c0_8] : memref<8x512xf32, #tpu.memory_space<vmem>>, vector<8x512xf32>
    tpu.vector_store %arg3[%c0_7, %c0_8], %15 {strides = array<i32>} : memref<8x512xf32, #tpu.memory_space<vmem>>, vector<8x512xf32>,
    return
  }
  func.func @transform_0(%arg0: i32) -> (i32, i32) {
    %c0_i32 = arith.constant 0 : i32
    %c0_i32_0 = arith.constant 0 : i32
    %c0_i32_1 = arith.constant 0 : i32
    return %c0_i32, %c0_i32_0 : i32, i32
  }
  func.func @transform_1(%arg0: i32) -> (i32, i32) {
    %c0_i32 = arith.constant 0 : i32
    %c0_i32_0 = arith.constant 0 : i32
    return %c0_i32, %arg0 : i32, i32
  }
  func.func @transform_2(%arg0: i32) -> (i32, i32) {
    %c0_i32 = arith.constant 0 : i32
    %c0_i32_0 = arith.constant 0 : i32
    return %c0_i32, %arg0 : i32, i32
  }
}

</mosaic_0001>

<bundles_post_ra>
// kernel: tpu_custom_call.1
= control target key start
LH: loop header
LB: loop body
LE: loop exit
PB: predicated region body
PF: predicated region fallthrough
CT: control target
= control target key end

     0   :  { %7 = vsyncpa [#allocation3], 0  ;;  %s346_s0 = inlined_call_operand.hbm [shape: f32[8,37], index: 0, kind: input, shape index: {}]   ;;  %s347_s1 = inlined_call_operand.hbm [shape: f32[37,512], index: 1, kind: input, shape index: {}]   ;;  %s348_s2 = inlined_call_operand.hbm [shape: f32[8,512], index: 2, kind: output, shape index: {}]  }
   0x1   :  { %8 = vsyncpa [#allocation6], 0 }
   0x2   :  { %9 = vsyncpa [#allocation4], 0  ;;  %s15_s11 = sshll.u32 %s346_s0, 4  ;;  %s317_s12 = smov [#allocation2]   ;;  %s16_s11 = int_to_ptr.hbm [resolvable:$true] %s15_s11 }
   0x3   :  { %s17_s13 = sshll.u32 %s317_s12, 4  ;;  %s25_s16 = sshll.u32 %s347_s1, 4  ;;  %s18_s13 = int_to_ptr.vmem [resolvable:$true] %s17_s13  ;;  %s26_s16 = int_to_ptr.hbm [resolvable:$true] %s25_s16 }
   0x4   :  { %20 = dma.hbm_to_vmem [thread:$0]  %s16_s11, 128, %s18_s13, [#allocation3]  }
   0x5   :  { %s318_s17 = smov [#allocation5]   ;;  %s319_s19 = smov 512  }
   0x6   :  { %s27_s18 = sshll.u32 %s318_s17, 4  ;;  %s320_s20 = smov 32   ;;  %s28_s18 = int_to_ptr.vmem [resolvable:$true] %s27_s18 }
   0x7   :  { %33 = dma.hbm_to_vmem [thread:$0]  %s26_s16, 2560, %s28_s18, [#allocation6], %s319_s19, %s319_s19, %s320_s20  }
   0x8   :  { %311 = dma.done.wait [#allocation3], 128  }
   0x9   :  { %312 = vsyncadd [#allocation3], 4294967168 }
   0xa   :  { %313 = dma.done.wait [#allocation6], 2560  }
   0xb   :  { %314 = vsyncadd [#allocation6], 4294964736  ;;  %vm67_vm0 = vcmask 1044480   ;;  %v59_v0 = vld [vmem:[#allocation5 + $0x80] sm:$0x1f]  ;;  %v56_v5 = vld [vmem:[#allocation5 + $0x68] sm:$0xff] }
   0xc   :  { %v60_v1 = vld [vmem:[#allocation5 + $0x88] sm:$0x1f]  ;;  %v61_v2 = vld [vmem:[#allocation5 + $0x90] sm:$0x1f]  ;;  %218 = vmatpush.msk.msra.mxu0 %vm67_vm0, %v59_v0  ;;  %v62_v3 = vld [vmem:[#allocation5 + $0x98] sm:$0x1f] }
   0xd   :  { %220 = vmatpush.msk.msra.mxu1 %vm67_vm0, %v60_v1  ;;  %v55_v4 = vld [vmem:[#allocation5 + $0x60] sm:$0xff]  ;;  %222 = vmatpush.msk.msra.mxu2 %vm67_vm0, %v61_v2  ;;  %v57_v6 = vld [vmem:[#allocation5 + $0x70] sm:$0xff]  ;;  %v58_v7 = vld [vmem:[#allocation5 + $0x78] sm:$0xff]  ;;  %vm63_vm1 = vcmask 302080   ;;  %s321_s0 = smov [#allocation7]   ;;  %s207_s23 = sshll.u32 %s348_s2, 4  ;;  %s208_s23 = int_to_ptr.hbm [resolvable:$true] %s207_s23 }
   0xe   :  { %224 = vmatpush.msk.msra.mxu3 %vm67_vm0, %v62_v3  ;;  %v51_v8 = vld [vmem:[#allocation5 + $0x40] sm:$0xff]  ;;  %92 = vmatpush.msra.mxu0 %v55_v4  ;;  %v52_v9 = vld [vmem:[#allocation5 + $0x48] sm:$0xff]  ;;  %v53_v10 = vld [vmem:[#allocation5 + $0x50] sm:$0xff]  ;;  %s205_s1 = sshll.u32 %s321_s0, 4  ;;  %s206_s1 = int_to_ptr.vmem [resolvable:$true] %s205_s1 }
   0xf   :  { %112 = vmatpush.msra.mxu1 %v56_v5  ;;  %v54_v11 = vld [vmem:[#allocation5 + $0x58] sm:$0xff]  ;;  %132 = vmatpush.msra.mxu2 %v57_v6  ;;  %v47_v12 = vld [vmem:[#allocation5 + $0x20] sm:$0xff]  ;;  %v48_v13 = vld [vmem:[#allocation5 + $0x28] sm:$0xff] }
  0x10   :  { %152 = vmatpush.msra.mxu3 %v58_v7  ;;  %93 = vmatpush.msra.mxu0 %v51_v8  ;;  %v49_v14 = vld [vmem:[#allocation5 + $0x30] sm:$0xff]  ;;  %v50_v15 = vld [vmem:[#allocation5 + $0x38] sm:$0xff]  ;;  %v43_v16 = vld [vmem:[#allocation5] sm:$0xff] }
  0x11   :  { %113 = vmatpush.msra.mxu1 %v52_v9  ;;  %133 = vmatpush.msra.mxu2 %v53_v10  ;;  %v44_v17 = vld [vmem:[#allocation5 + $0x8] sm:$0xff]  ;;  %v45_v18 = vld [vmem:[#allocation5 + $0x10] sm:$0xff]  ;;  %v46_v19 = vld [vmem:[#allocation5 + $0x18] sm:$0xff] }
  0x12   :  { %153 = vmatpush.msra.mxu3 %v54_v11  ;;  %94 = vmatpush.msra.mxu0 %v47_v12  ;;  %v42_v20 = vld [vmem:[#allocation2] sm:$0xff] }
  0x13   :  { %114 = vmatpush.msra.mxu1 %v48_v13  ;;  %134 = vmatpush.msra.mxu2 %v49_v14 }
  0x14   :  { %154 = vmatpush.msra.mxu3 %v50_v15  ;;  %95 = vmatpush.msra.mxu0 %v43_v16 }
  0x15   :  { %115 = vmatpush.msra.mxu1 %v44_v17  ;;  %135 = vmatpush.msra.mxu2 %v45_v18 }
  0x16   :  { %155 = vmatpush.msra.mxu3 %v46_v19  ;;  %219 = vmatmul.msk.f32.vlgmr.msra.gmra.mxu0 %vm63_vm1, %v42_v20 }
  0x17   :  { %221 = vmatmul.msk.f32.vlgmr.msra.gmra.mxu1 %vm63_vm1, %v42_v20  ;;  %223 = vmatmul.msk.f32.vlgmr.msra.gmra.mxu2 %vm63_vm1, %v42_v20 }
  0x18   :  { %225 = vmatmul.msk.f32.vlgmr.msra.gmra.mxu3 %vm63_vm1, %v42_v20 }
  0x93   :  { %v97_v21 = vpop.f32.mrf.mxu0 }
  0x94   :  { %v117_v22 = vpop.f32.mrf.mxu1  ;;  %v164_v23 = vmul.f32 0.044715, %v97_v21  ;;  %v160_v47 = vmul.f32 0.5, %v97_v21 }
  0x95   :  { %v165_v24 = vmul.f32 0.044715, %v117_v22  ;;  %v161_v49 = vmul.f32 0.5, %v117_v22 }
  0x96   :  { %v168_v25 = vmul.f32 %v164_v23, %v97_v21 }
  0x97   :  { %v169_v26 = vmul.f32 %v165_v24, %v117_v22 }
  0x98   :  { %v172_v27 = vmul.f32 %v168_v25, %v97_v21 }
  0x99   :  { %v173_v28 = vmul.f32 %v169_v26, %v117_v22 }
  0x9a   :  { %v176_v29 = vadd.f32 %v172_v27, %v97_v21  ;;  %v137_v31 = vpop.f32.mrf.mxu2 }
  0x9b   :  { %v177_v30 = vadd.f32 %v173_v28, %v117_v22  ;;  %v157_v32 = vpop.f32.mrf.mxu3  ;;  %v166_v33 = vmul.f32 0.044715, %v137_v31  ;;  %v162_v55 = vmul.f32 0.5, %v137_v31 }
  0x9c   :  { %v167_v34 = vmul.f32 0.044715, %v157_v32  ;;  %v180_v35 = vmul.f32 0.7978846, %v176_v29  ;;  %v163_v57 = vmul.f32 0.5, %v157_v32 }
  0x9d   :  { %v181_v36 = vmul.f32 0.7978846, %v177_v30  ;;  %v170_v37 = vmul.f32 %v166_v33, %v137_v31 }
  0x9e   :  { %v171_v38 = vmul.f32 %v167_v34, %v157_v32  ;;  %231 = vtanh.f32 %v180_v35 }
  0x9f   :  { %233 = vtanh.f32 %v181_v36  ;;  %v174_v39 = vmul.f32 %v170_v37, %v137_v31 }
  0xa0   :  { %v175_v40 = vmul.f32 %v171_v38, %v157_v32 }
  0xa1   :  { %v178_v41 = vadd.f32 %v174_v39, %v137_v31 }
  0xa2   :  { %v179_v42 = vadd.f32 %v175_v40, %v157_v32 }
  0xa3   :  { %v182_v43 = vmul.f32 0.7978846, %v178_v41 }
  0xa4   :  { %v183_v44 = vmul.f32 0.7978846, %v179_v42  ;;  %v232_v45 = vpop.eup %231 }
  0xa5   :  { %v234_v46 = vpop.eup %233  ;;  %v188_v48 = vadd.f32 1.0, %v232_v45  ;;  %235 = vtanh.f32 %v182_v43 }
  0xa6   :  { %v189_v50 = vadd.f32 1.0, %v234_v46  ;;  %237 = vtanh.f32 %v183_v44 }
  0xa7   :  { %v192_v51 = vmul.f32 %v188_v48, %v160_v47 }
  0xa8   :  { %v193_v52 = vmul.f32 %v189_v50, %v161_v49 }
  0xa9   :  { %196 = vst [vmem:[#allocation7] sm:$0xff] %v192_v51 }
  0xaa   :  { %197 = vst [vmem:[#allocation7 + $0x8] sm:$0xff] %v193_v52 }
  0xab   :  { %v236_v53 = vpop.eup %235 }
  0xac   :  { %v238_v54 = vpop.eup %237  ;;  %v190_v56 = vadd.f32 1.0, %v236_v53 }
  0xad   :  { %v191_v58 = vadd.f32 1.0, %v238_v54 }
  0xae   :  { %v194_v59 = vmul.f32 %v190_v56, %v162_v55 }
  0xaf   :  { %v195_v60 = vmul.f32 %v191_v58, %v163_v57 }
  0xb0   :  { %198 = vst [vmem:[#allocation7 + $0x10] sm:$0xff] %v194_v59 }
  0xb1   :  { %199 = vst [vmem:[#allocation7 + $0x18] sm:$0xff] %v195_v60 }
  0xb2   :  { %210 = dma.vmem_to_hbm [thread:$0]  %s206_s1, 512, %s208_s23, [#allocation4]  }
  0xb3   :  { %315 = dma.done.wait [#allocation4], 512  }
  0xb4   :  { %316 = vsyncadd [#allocation4], 4294966784 }
  0xb5   :  { %215 = vsyncpa [#allocation3], 1 }
  0xb6   :  { %216 = vsyncpa [#allocation6], 1 }
  0xb7   :  { %217 = vsyncpa [#allocation4], 1 }

</bundles_post_ra>
